<compile_context>
chip_gen: v5e
topology: v5e:2x2
jax: 0.10.0
libtpu: 0.0.40
codegen_flags: <defaults>
</compile_context>

<pallas_src>
import functools
import itertools

import numpy as np
import jax
import jax.numpy as jnp
from jax.experimental import pallas as pl
from jax.experimental.pallas import tpu as pltpu


# ----------------------------------------------------------------------------
# Fused forward kernel
# ----------------------------------------------------------------------------

def _fused_forward_kernel(x_ref, w1_ref, attn_ref, atte_ref, b1_ref,
                          w2_ref, b2_ref, mask_ref, binv_ref, dinv_ref,
                          bert_ref, wcg_ref, wcb_ref, bc_ref,
                          o_ref, *, heads, f1):
    x = x_ref[...]        # (N, Fin)   node features (per-segment BERT embeddings)
    w1 = w1_ref[...]      # (Fin, H*F1) conv1.lin weight
    mask = mask_ref[...]  # (N, E)     incidence matrix (1.0 where node in edge)
    binv = binv_ref[...]  # (E, 1)     1 / |edge|
    dinv = dinv_ref[...]  # (N, 1)     1 / deg(node)
    b1 = b1_ref[...]      # (1, H*F1)  conv1.bias
    w2 = w2_ref[...]      # (H*F1, F2) conv2.lin weight

    # conv1 linear transform of node features (all heads, concatenated layout).
    x1 = jnp.dot(x, w1, preferred_element_type=jnp.float32)               # (N, H*F1)

    # hyperedge_attr is all-ones, so every transformed edge-attr row equals the
    # column-sums of W1 -> one reduce replaces the (E,Fin)x(Fin,H*F1) matmul.
    w1sum = jnp.sum(w1, axis=0, keepdims=True)                            # (1, H*F1)

    # attention parameters are stored block-diagonally (H*F1, H), so the node /
    # edge attention scores of every head come out of a single matmul each.
    s_node = jnp.dot(x1, attn_ref[...], preferred_element_type=jnp.float32)    # (N, H)
    s_edge = jnp.dot(w1sum, atte_ref[...], preferred_element_type=jnp.float32)  # (1, H)
    logits = s_node + s_edge
    logits = jnp.where(logits >= 0, logits, 0.2 * logits)                 # leaky_relu(0.2)

    # --- conv1 attention propagation + bias + ReLU + conv2 linear, heads unrolled.
    # relu(cat_h(out_h) + b1) @ W2 == sum_h relu(out_h + b1_h) @ W2_h, so the
    # concatenated-heads tensor is never materialized (stays in vregs).
    x2 = None
    for h in range(heads):
        lo, hi = h * f1, (h + 1) * f1
        xh = x1[:, lo:hi]                                                  # (N, F1)
        logit = logits[:, h:h + 1]                                         # (N, 1)

        # softmax over the nodes of each hyperedge (attention_mode='node').
        masked = jnp.where(mask > 0,
                           jnp.broadcast_to(logit, mask.shape),
                           jnp.float32(-1e30))                             # (N, E)
        m = jnp.max(masked, axis=0, keepdims=True)                         # (1, E)
        p = jnp.exp(masked - m) * mask
        denom = jnp.maximum(jnp.sum(p, axis=0, keepdims=True),
                            jnp.float32(1e-30))                            # guard 0/0
        alpha = p / denom                                                  # (N, E)

        # node -> hyperedge aggregation (B^-1 scaled), then hyperedge -> node (D^-1).
        edge_feat = jax.lax.dot_general(alpha, xh, (((0,), (0,)), ((), ())),
                                        preferred_element_type=jnp.float32) * binv  # (E, F1)
        node_out = jnp.dot(alpha, edge_feat,
                           preferred_element_type=jnp.float32) * dinv      # (N, F1)

        # conv1 bias + ReLU, then this head's contribution to conv2's linear input.
        h1_h = jnp.maximum(node_out + b1[:, lo:hi], 0.0)                   # (N, F1)
        contrib = jnp.dot(h1_h, w2[lo:hi, :],
                          preferred_element_type=jnp.float32)              # (N, F2)
        x2 = contrib if x2 is None else x2 + contrib

    # --- conv2: un-attended propagation + bias ---
    edge2 = jax.lax.dot_general(mask, x2, (((0,), (0,)), ((), ())),
                                preferred_element_type=jnp.float32) * binv   # (E, F2)
    h2 = jnp.dot(mask, edge2, preferred_element_type=jnp.float32) * dinv + b2_ref[...]  # (N, F2)

    # --- global_add_pool + concat(bert pooled) + classifier ---
    #   [pooled | bert] @ [Wg; Wb] + b  ==  pooled @ Wg + bert @ Wb + b
    pooled = jnp.sum(h2, axis=0, keepdims=True)                            # (1, F2)
    o_ref[...] = (jnp.dot(pooled, wcg_ref[...], preferred_element_type=jnp.float32)
                  + jnp.dot(bert_ref[...], wcb_ref[...], preferred_element_type=jnp.float32)
                  + bc_ref[...])


def fused_forward(node_emb, w1, att_node_blk, att_edge_blk, b1, w2, b2,
                  mask, binv, dinv, bert_pooled, wc_g, wc_b, bc, *, heads, f1):
    N, Fin = node_emb.shape
    E = mask.shape[1]
    HF1 = heads * f1
    F2 = w2.shape[1]
    Hb = bert_pooled.shape[1]

    kernel = functools.partial(_fused_forward_kernel, heads=heads, f1=f1)
    return pl.pallas_call(
        kernel,
        out_shape=jax.ShapeDtypeStruct((1, 2), jnp.float32),
        grid=(1,),
        in_specs=[
            pl.BlockSpec((N, Fin), lambda i: (0, 0)),        # node_emb
            pl.BlockSpec((Fin, HF1), lambda i: (0, 0)),      # w1
            pl.BlockSpec((HF1, heads), lambda i: (0, 0)),    # att_node (block-diag)
            pl.BlockSpec((HF1, heads), lambda i: (0, 0)),    # att_edge (block-diag)
            pl.BlockSpec((1, HF1), lambda i: (0, 0)),        # b1
            pl.BlockSpec((HF1, F2), lambda i: (0, 0)),       # w2
            pl.BlockSpec((1, F2), lambda i: (0, 0)),         # b2
            pl.BlockSpec((N, E), lambda i: (0, 0)),          # incidence mask
            pl.BlockSpec((E, 1), lambda i: (0, 0)),          # B^-1
            pl.BlockSpec((N, 1), lambda i: (0, 0)),          # D^-1
            pl.BlockSpec((1, Hb), lambda i: (0, 0)),         # bert pooled
            pl.BlockSpec((F2, 2), lambda i: (0, 0)),         # classifier W (graph part)
            pl.BlockSpec((Hb, 2), lambda i: (0, 0)),         # classifier W (bert part)
            pl.BlockSpec((1, 2), lambda i: (0, 0)),          # classifier bias
        ],
        out_specs=pl.BlockSpec((1, 2), lambda i: (0, 0)),
        compiler_params=pltpu.CompilerParams(dimension_semantics=("arbitrary",)),
    )(node_emb, w1, att_node_blk, att_edge_blk, b1, w2, b2,
      mask, binv, dinv, bert_pooled, wc_g, wc_b, bc)


# ----------------------------------------------------------------------------
# Host-side glue: hypergraph structure (generate_hyperedges / convert_to_tensor)
# ----------------------------------------------------------------------------

def build_hypergraph_structure(num_nodes):
    hyperedges = []
    for r in range(2, num_nodes + 1):
        hyperedges.extend(itertools.combinations(range(num_nodes), r))
    num_edges = len(hyperedges)
    incidence = np.zeros((num_nodes, num_edges), dtype=np.float32)
    for e_id, he in enumerate(hyperedges):
        for v in he:
            incidence[v, e_id] = 1.0
    # D[v] = sum_e H[v,e] (hyperedge_weight == 1), B[e] = |edge|
    deg_n = incidence.sum(axis=1)
    deg_e = incidence.sum(axis=0)
    dinv = np.where(deg_n > 0, 1.0 / np.maximum(deg_n, 1e-30), 0.0).astype(np.float32)
    binv = np.where(deg_e > 0, 1.0 / np.maximum(deg_e, 1e-30), 0.0).astype(np.float32)
    return (jnp.asarray(incidence),
            jnp.asarray(binv).reshape(num_edges, 1),
            jnp.asarray(dinv).reshape(num_nodes, 1),
            num_edges)


def _block_diag_att(att, heads, f1):
    """(H, F1) attention vector -> block-diagonal (H*F1, H) layout (one-time)."""
    m = jnp.zeros((heads * f1, heads), jnp.float32)
    for h in range(heads):
        m = m.at[h * f1:(h + 1) * f1, h].set(att[h])
    return m


def init_params(key, num_features, heads, bert_hidden, f1=32, f2=16):
    ks = jax.random.split(key, 7)

    def glorot(k, shape):
        scale = (2.0 / (shape[0] + shape[-1])) ** 0.5
        return scale * jax.random.normal(k, shape, jnp.float32)

    att_node = 0.1 * jax.random.normal(ks[1], (heads, f1), jnp.float32)  # conv1.att[:, :F1]
    att_edge = 0.1 * jax.random.normal(ks[2], (heads, f1), jnp.float32)  # conv1.att[:, F1:]

    return dict(
        w1=glorot(ks[0], (num_features, heads * f1)),                    # conv1.lin
        att_node_blk=_block_diag_att(att_node, heads, f1),               # (H*F1, H)
        att_edge_blk=_block_diag_att(att_edge, heads, f1),               # (H*F1, H)
        b1=jnp.zeros((1, heads * f1), jnp.float32),                      # conv1.bias
        w2=glorot(ks[3], (heads * f1, f2)),                              # conv2.lin
        b2=jnp.zeros((1, f2), jnp.float32),                              # conv2.bias
        wc_g=glorot(ks[4], (f2, 2)),                                     # classifier W (graph part)
        wc_b=glorot(ks[5], (bert_hidden, 2)),                            # classifier W (bert part)
        bc=jnp.zeros((1, 2), jnp.float32),                               # classifier bias
    )


def hypergraph_and_llm_forward(params, node_emb, bert_pooled, label,
                               mask, binv, dinv, heads, f1=32):
    out = fused_forward(
        node_emb, params['w1'], params['att_node_blk'], params['att_edge_blk'],
        params['b1'], params['w2'], params['b2'], mask, binv, dinv,
        bert_pooled, params['wc_g'], params['wc_b'], params['bc'],
        heads=heads, f1=f1)
    return out, label


# ----------------------------------------------------------------------------
# Main
# ----------------------------------------------------------------------------

if __name__ == "__main__":
    N_NODES = 4        # number of text segments / graph nodes
    NUM_FEATURES = 64  # stand-in for BERT hidden size 768 (kept small & synthetic)
    BERT_HIDDEN = 64   # stand-in for bert_model.config.hidden_size
    HEADS = 2          # attention_heads
    F1 = 32            # conv1 out_channels per head

    key = jax.random.PRNGKey(0)
    kx, kb, kp = jax.random.split(key, 3)

    # synthetic per-segment BERT pooled embeddings (graph node features)
    node_emb = jax.random.normal(kx, (N_NODES, NUM_FEATURES), jnp.float32)
    # synthetic whole-text BERT pooled output
    bert_pooled = jax.random.normal(kb, (1, BERT_HIDDEN), jnp.float32)
    label = jnp.array(1, jnp.int32)

    mask, binv, dinv, num_edges = build_hypergraph_structure(N_NODES)
    params = init_params(kp, NUM_FEATURES, HEADS, BERT_HIDDEN, f1=F1)

    out, y = hypergraph_and_llm_forward(params, node_emb, bert_pooled, label,
                                        mask, binv, dinv, HEADS, f1=F1)
    jax.block_until_ready(out)
    jax.block_until_ready(y)
    assert out.shape == (1, 2) and bool(jnp.all(jnp.isfinite(out)))
    print("KERNEL_OK")
</pallas_src>

<mosaic_0001>
module attributes {stable_mosaic.version = 11 : i64} {
  func.func @_fused_forward_kernel(%arg0: i32, %arg1: memref<4x64xf32, #tpu.memory_space<vmem>>, %arg2: memref<64x64xf32, #tpu.memory_space<vmem>>, %arg3: memref<64x2xf32, #tpu.memory_space<vmem>>, %arg4: memref<64x2xf32, #tpu.memory_space<vmem>>, %arg5: memref<1x64xf32, #tpu.memory_space<vmem>>, %arg6: memref<64x16xf32, #tpu.memory_space<vmem>>, %arg7: memref<1x16xf32, #tpu.memory_space<vmem>>, %arg8: memref<4x11xf32, #tpu.memory_space<vmem>>, %arg9: memref<11x1xf32, #tpu.memory_space<vmem>>, %arg10: memref<4x1xf32, #tpu.memory_space<vmem>>, %arg11: memref<1x64xf32, #tpu.memory_space<vmem>>, %arg12: memref<16x2xf32, #tpu.memory_space<vmem>>, %arg13: memref<64x2xf32, #tpu.memory_space<vmem>>, %arg14: memref<1x2xf32, #tpu.memory_space<vmem>>, %arg15: memref<1x2xf32, #tpu.memory_space<vmem>>) attributes {dimension_semantics = [#tpu.dimension_semantics<arbitrary>], iteration_bounds = array<i64: 1>, scalar_prefetch = 0 : i64, scratch_operands = 0 : i64, tpu.core_type = #tpu.core_type<tc>, window_params = [{pipeline_mode = #tpu.pipeline_mode<synchronous>, transform_indices = @transform_0, window_bounds = array<i64: 4, 64>}, {pipeline_mode = #tpu.pipeline_mode<synchronous>, transform_indices = @transform_1, window_bounds = array<i64: 64, 64>}, {pipeline_mode = #tpu.pipeline_mode<synchronous>, transform_indices = @transform_2, window_bounds = array<i64: 64, 2>}, {pipeline_mode = #tpu.pipeline_mode<synchronous>, transform_indices = @transform_3, window_bounds = array<i64: 64, 2>}, {pipeline_mode = #tpu.pipeline_mode<synchronous>, transform_indices = @transform_4, window_bounds = array<i64: 1, 64>}, {pipeline_mode = #tpu.pipeline_mode<synchronous>, transform_indices = @transform_5, window_bounds = array<i64: 64, 16>}, {pipeline_mode = #tpu.pipeline_mode<synchronous>, transform_indices = @transform_6, window_bounds = array<i64: 1, 16>}, {pipeline_mode = #tpu.pipeline_mode<synchronous>, transform_indices = @transform_7, window_bounds = array<i64: 4, 11>}, {pipeline_mode = #tpu.pipeline_mode<synchronous>, transform_indices = @transform_8, window_bounds = array<i64: 11, 1>}, {pipeline_mode = #tpu.pipeline_mode<synchronous>, transform_indices = @transform_9, window_bounds = array<i64: 4, 1>}, {pipeline_mode = #tpu.pipeline_mode<synchronous>, transform_indices = @transform_10, window_bounds = array<i64: 1, 64>}, {pipeline_mode = #tpu.pipeline_mode<synchronous>, transform_indices = @transform_11, window_bounds = array<i64: 16, 2>}, {pipeline_mode = #tpu.pipeline_mode<synchronous>, transform_indices = @transform_12, window_bounds = array<i64: 64, 2>}, {pipeline_mode = #tpu.pipeline_mode<synchronous>, transform_indices = @transform_13, window_bounds = array<i64: 1, 2>}, {pipeline_mode = #tpu.pipeline_mode<synchronous>, transform_indices = @transform_14, window_bounds = array<i64: 1, 2>}]} {
    %c0 = arith.constant 0 : index
    %c0_0 = arith.constant 0 : index
    %0 = vector.load %arg1[%c0, %c0_0] : memref<4x64xf32, #tpu.memory_space<vmem>>, vector<4x64xf32>
    %c0_1 = arith.constant 0 : index
    %c0_2 = arith.constant 0 : index
    %1 = vector.load %arg2[%c0_1, %c0_2] : memref<64x64xf32, #tpu.memory_space<vmem>>, vector<64x64xf32>
    %c0_3 = arith.constant 0 : index
    %c0_4 = arith.constant 0 : index
    %2 = vector.load %arg8[%c0_3, %c0_4] : memref<4x11xf32, #tpu.memory_space<vmem>>, vector<4x11xf32>
    %c0_5 = arith.constant 0 : index
    %c0_6 = arith.constant 0 : index
    %3 = vector.load %arg9[%c0_5, %c0_6] : memref<11x1xf32, #tpu.memory_space<vmem>>, vector<11x1xf32>
    %c0_7 = arith.constant 0 : index
    %c0_8 = arith.constant 0 : index
    %4 = vector.load %arg10[%c0_7, %c0_8] : memref<4x1xf32, #tpu.memory_space<vmem>>, vector<4x1xf32>
    %c0_9 = arith.constant 0 : index
    %c0_10 = arith.constant 0 : index
    %5 = vector.load %arg5[%c0_9, %c0_10] : memref<1x64xf32, #tpu.memory_space<vmem>>, vector<1x64xf32>
    %c0_11 = arith.constant 0 : index
    %c0_12 = arith.constant 0 : index
    %6 = vector.load %arg6[%c0_11, %c0_12] : memref<64x16xf32, #tpu.memory_space<vmem>>, vector<64x16xf32>
    %cst = arith.constant dense<0.000000e+00> : vector<4x64xf32>
    %7 = tpu.matmul %0, %1, %cst {dimension_numbers = #tpu.dot_dimension_numbers<[1], [0], [0], [1], [0, 0, 1, 1], [], []>} : vector<4x64xf32>, vector<64x64xf32>, vector<4x64xf32> -> vector<4x64xf32>
    %cst_13 = arith.constant dense<0.000000e+00> : vector<64xf32>
    %8 = vector.multi_reduction <add>, %1, %cst_13 [0] : vector<64x64xf32> to vector<64xf32>
    %9 = vector.shape_cast %8 : vector<64xf32> to vector<1x64xf32>
    %c0_14 = arith.constant 0 : index
    %c0_15 = arith.constant 0 : index
    %10 = vector.load %arg3[%c0_14, %c0_15] : memref<64x2xf32, #tpu.memory_space<vmem>>, vector<64x2xf32>
    %cst_16 = arith.constant dense<0.000000e+00> : vector<4x2xf32>
    %11 = tpu.matmul %7, %10, %cst_16 {dimension_numbers = #tpu.dot_dimension_numbers<[1], [0], [0], [1], [0, 0, 1, 1], [], []>} : vector<4x64xf32>, vector<64x2xf32>, vector<4x2xf32> -> vector<4x2xf32>
    %c0_17 = arith.constant 0 : index
    %c0_18 = arith.constant 0 : index
    %12 = vector.load %arg4[%c0_17, %c0_18] : memref<64x2xf32, #tpu.memory_space<vmem>>, vector<64x2xf32>
    %cst_19 = arith.constant dense<0.000000e+00> : vector<1x2xf32>
    %13 = tpu.matmul %9, %12, %cst_19 {dimension_numbers = #tpu.dot_dimension_numbers<[1], [0], [0], [1], [0, 0, 1, 1], [], []>} : vector<1x64xf32>, vector<64x2xf32>, vector<1x2xf32> -> vector<1x2xf32>
    %14 = vector.broadcast %13 : vector<1x2xf32> to vector<4x2xf32>
    %15 = arith.addf %11, %14 : vector<4x2xf32>
    %cst_20 = arith.constant 0.000000e+00 : f32
    %16 = vector.broadcast %cst_20 : f32 to vector<4x2xf32>
    %17 = arith.cmpf oge, %15, %16 : vector<4x2xf32>
    %cst_21 = arith.constant 2.000000e-01 : f32
    %18 = vector.broadcast %cst_21 : f32 to vector<4x2xf32>
    %19 = arith.mulf %18, %15 : vector<4x2xf32>
    %20 = arith.select %17, %15, %19 : vector<4x2xi1>, vector<4x2xf32>
    %21 = vector.extract_strided_slice %7 {offsets = [0, 0], sizes = [4, 32], strides = [1, 1]} : vector<4x64xf32> to vector<4x32xf32>
    %22 = vector.extract_strided_slice %20 {offsets = [0, 0], sizes = [4, 1], strides = [1, 1]} : vector<4x2xf32> to vector<4x1xf32>
    %cst_22 = arith.constant 0.000000e+00 : f32
    %23 = vector.broadcast %cst_22 : f32 to vector<4x11xf32>
    %24 = arith.cmpf ogt, %2, %23 : vector<4x11xf32>
    %25 = vector.shape_cast %22 : vector<4x1xf32> to vector<4x1xf32>
    %26 = vector.broadcast %25 : vector<4x1xf32> to vector<4x11xf32>
    %cst_23 = arith.constant -1.000000e+30 : f32
    %27 = vector.broadcast %cst_23 : f32 to vector<4x11xf32>
    %28 = arith.select %24, %26, %27 : vector<4x11xi1>, vector<4x11xf32>
    %cst_24 = arith.constant dense<0xFF800000> : vector<11xf32>
    %29 = vector.multi_reduction <maximumf>, %28, %cst_24 [0] : vector<4x11xf32> to vector<11xf32>
    %30 = vector.shape_cast %29 : vector<11xf32> to vector<1x11xf32>
    %31 = vector.broadcast %30 : vector<1x11xf32> to vector<4x11xf32>
    %32 = arith.subf %28, %31 : vector<4x11xf32>
    %33 = math.exp %32 : vector<4x11xf32>
    %34 = arith.mulf %33, %2 : vector<4x11xf32>
    %cst_25 = arith.constant dense<0.000000e+00> : vector<11xf32>
    %35 = vector.multi_reduction <add>, %34, %cst_25 [0] : vector<4x11xf32> to vector<11xf32>
    %36 = vector.shape_cast %35 : vector<11xf32> to vector<1x11xf32>
    %cst_26 = arith.constant 1.000000e-30 : f32
    %37 = vector.broadcast %cst_26 : f32 to vector<1x11xf32>
    %38 = arith.maximumf %36, %37 : vector<1x11xf32>
    %39 = vector.broadcast %38 : vector<1x11xf32> to vector<4x11xf32>
    %40 = arith.divf %34, %39 : vector<4x11xf32>
    %cst_27 = arith.constant dense<0.000000e+00> : vector<11x32xf32>
    %41 = tpu.matmul %40, %21, %cst_27 {dimension_numbers = #tpu.dot_dimension_numbers<[0], [0], [1], [1], [0, 1, 1, 1], [], []>} : vector<4x11xf32>, vector<4x32xf32>, vector<11x32xf32> -> vector<11x32xf32>
    %42 = vector.broadcast %3 : vector<11x1xf32> to vector<11x32xf32>
    %43 = arith.mulf %41, %42 : vector<11x32xf32>
    %cst_28 = arith.constant dense<0.000000e+00> : vector<4x32xf32>
    %44 = tpu.matmul %40, %43, %cst_28 {dimension_numbers = #tpu.dot_dimension_numbers<[1], [0], [0], [1], [0, 0, 1, 1], [], []>} : vector<4x11xf32>, vector<11x32xf32>, vector<4x32xf32> -> vector<4x32xf32>
    %45 = vector.broadcast %4 : vector<4x1xf32> to vector<4x32xf32>
    %46 = arith.mulf %44, %45 : vector<4x32xf32>
    %47 = vector.extract_strided_slice %5 {offsets = [0, 0], sizes = [1, 32], strides = [1, 1]} : vector<1x64xf32> to vector<1x32xf32>
    %48 = vector.broadcast %47 : vector<1x32xf32> to vector<4x32xf32>
    %49 = arith.addf %46, %48 : vector<4x32xf32>
    %cst_29 = arith.constant 0.000000e+00 : f32
    %50 = vector.broadcast %cst_29 : f32 to vector<4x32xf32>
    %51 = arith.maximumf %49, %50 : vector<4x32xf32>
    %52 = vector.extract_strided_slice %6 {offsets = [0, 0], sizes = [32, 16], strides = [1, 1]} : vector<64x16xf32> to vector<32x16xf32>
    %cst_30 = arith.constant dense<0.000000e+00> : vector<4x16xf32>
    %53 = tpu.matmul %51, %52, %cst_30 {dimension_numbers = #tpu.dot_dimension_numbers<[1], [0], [0], [1], [0, 0, 1, 1], [], []>} : vector<4x32xf32>, vector<32x16xf32>, vector<4x16xf32> -> vector<4x16xf32>
    %54 = vector.extract_strided_slice %7 {offsets = [0, 32], sizes = [4, 32], strides = [1, 1]} : vector<4x64xf32> to vector<4x32xf32>
    %55 = vector.extract_strided_slice %20 {offsets = [0, 1], sizes = [4, 1], strides = [1, 1]} : vector<4x2xf32> to vector<4x1xf32>
    %cst_31 = arith.constant 0.000000e+00 : f32
    %56 = vector.broadcast %cst_31 : f32 to vector<4x11xf32>
    %57 = arith.cmpf ogt, %2, %56 : vector<4x11xf32>
    %58 = vector.shape_cast %55 : vector<4x1xf32> to vector<4x1xf32>
    %59 = vector.broadcast %58 : vector<4x1xf32> to vector<4x11xf32>
    %cst_32 = arith.constant -1.000000e+30 : f32
    %60 = vector.broadcast %cst_32 : f32 to vector<4x11xf32>
    %61 = arith.select %57, %59, %60 : vector<4x11xi1>, vector<4x11xf32>
    %cst_33 = arith.constant dense<0xFF800000> : vector<11xf32>
    %62 = vector.multi_reduction <maximumf>, %61, %cst_33 [0] : vector<4x11xf32> to vector<11xf32>
    %63 = vector.shape_cast %62 : vector<11xf32> to vector<1x11xf32>
    %64 = vector.broadcast %63 : vector<1x11xf32> to vector<4x11xf32>
    %65 = arith.subf %61, %64 : vector<4x11xf32>
    %66 = math.exp %65 : vector<4x11xf32>
    %67 = arith.mulf %66, %2 : vector<4x11xf32>
    %cst_34 = arith.constant dense<0.000000e+00> : vector<11xf32>
    %68 = vector.multi_reduction <add>, %67, %cst_34 [0] : vector<4x11xf32> to vector<11xf32>
    %69 = vector.shape_cast %68 : vector<11xf32> to vector<1x11xf32>
    %cst_35 = arith.constant 1.000000e-30 : f32
    %70 = vector.broadcast %cst_35 : f32 to vector<1x11xf32>
    %71 = arith.maximumf %69, %70 : vector<1x11xf32>
    %72 = vector.broadcast %71 : vector<1x11xf32> to vector<4x11xf32>
    %73 = arith.divf %67, %72 : vector<4x11xf32>
    %cst_36 = arith.constant dense<0.000000e+00> : vector<11x32xf32>
    %74 = tpu.matmul %73, %54, %cst_36 {dimension_numbers = #tpu.dot_dimension_numbers<[0], [0], [1], [1], [0, 1, 1, 1], [], []>} : vector<4x11xf32>, vector<4x32xf32>, vector<11x32xf32> -> vector<11x32xf32>
    %75 = vector.broadcast %3 : vector<11x1xf32> to vector<11x32xf32>
    %76 = arith.mulf %74, %75 : vector<11x32xf32>
    %cst_37 = arith.constant dense<0.000000e+00> : vector<4x32xf32>
    %77 = tpu.matmul %73, %76, %cst_37 {dimension_numbers = #tpu.dot_dimension_numbers<[1], [0], [0], [1], [0, 0, 1, 1], [], []>} : vector<4x11xf32>, vector<11x32xf32>, vector<4x32xf32> -> vector<4x32xf32>
    %78 = vector.broadcast %4 : vector<4x1xf32> to vector<4x32xf32>
    %79 = arith.mulf %77, %78 : vector<4x32xf32>
    %80 = vector.extract_strided_slice %5 {offsets = [0, 32], sizes = [1, 32], strides = [1, 1]} : vector<1x64xf32> to vector<1x32xf32>
    %81 = vector.broadcast %80 : vector<1x32xf32> to vector<4x32xf32>
    %82 = arith.addf %79, %81 : vector<4x32xf32>
    %cst_38 = arith.constant 0.000000e+00 : f32
    %83 = vector.broadcast %cst_38 : f32 to vector<4x32xf32>
    %84 = arith.maximumf %82, %83 : vector<4x32xf32>
    %85 = vector.extract_strided_slice %6 {offsets = [32, 0], sizes = [32, 16], strides = [1, 1]} : vector<64x16xf32> to vector<32x16xf32>
    %cst_39 = arith.constant dense<0.000000e+00> : vector<4x16xf32>
    %86 = tpu.matmul %84, %85, %cst_39 {dimension_numbers = #tpu.dot_dimension_numbers<[1], [0], [0], [1], [0, 0, 1, 1], [], []>} : vector<4x32xf32>, vector<32x16xf32>, vector<4x16xf32> -> vector<4x16xf32>
    %87 = arith.addf %53, %86 : vector<4x16xf32>
    %cst_40 = arith.constant dense<0.000000e+00> : vector<11x16xf32>
    %88 = tpu.matmul %2, %87, %cst_40 {dimension_numbers = #tpu.dot_dimension_numbers<[0], [0], [1], [1], [0, 1, 1, 1], [], []>} : vector<4x11xf32>, vector<4x16xf32>, vector<11x16xf32> -> vector<11x16xf32>
    %89 = vector.broadcast %3 : vector<11x1xf32> to vector<11x16xf32>
    %90 = arith.mulf %88, %89 : vector<11x16xf32>
    %cst_41 = arith.constant dense<0.000000e+00> : vector<4x16xf32>
    %91 = tpu.matmul %2, %90, %cst_41 {dimension_numbers = #tpu.dot_dimension_numbers<[1], [0], [0], [1], [0, 0, 1, 1], [], []>} : vector<4x11xf32>, vector<11x16xf32>, vector<4x16xf32> -> vector<4x16xf32>
    %92 = vector.broadcast %4 : vector<4x1xf32> to vector<4x16xf32>
    %93 = arith.mulf %91, %92 : vector<4x16xf32>
    %c0_42 = arith.constant 0 : index
    %c0_43 = arith.constant 0 : index
    %94 = vector.load %arg7[%c0_42, %c0_43] : memref<1x16xf32, #tpu.memory_space<vmem>>, vector<1x16xf32>
    %95 = vector.broadcast %94 : vector<1x16xf32> to vector<4x16xf32>
    %96 = arith.addf %93, %95 : vector<4x16xf32>
    %cst_44 = arith.constant dense<0.000000e+00> : vector<16xf32>
    %97 = vector.multi_reduction <add>, %96, %cst_44 [0] : vector<4x16xf32> to vector<16xf32>
    %98 = vector.shape_cast %97 : vector<16xf32> to vector<1x16xf32>
    %c0_45 = arith.constant 0 : index
    %c0_46 = arith.constant 0 : index
    %99 = vector.load %arg12[%c0_45, %c0_46] : memref<16x2xf32, #tpu.memory_space<vmem>>, vector<16x2xf32>
    %cst_47 = arith.constant dense<0.000000e+00> : vector<1x2xf32>
    %100 = tpu.matmul %98, %99, %cst_47 {dimension_numbers = #tpu.dot_dimension_numbers<[1], [0], [0], [1], [0, 0, 1, 1], [], []>} : vector<1x16xf32>, vector<16x2xf32>, vector<1x2xf32> -> vector<1x2xf32>
    %c0_48 = arith.constant 0 : index
    %c0_49 = arith.constant 0 : index
    %101 = vector.load %arg11[%c0_48, %c0_49] : memref<1x64xf32, #tpu.memory_space<vmem>>, vector<1x64xf32>
    %c0_50 = arith.constant 0 : index
    %c0_51 = arith.constant 0 : index
    %102 = vector.load %arg13[%c0_50, %c0_51] : memref<64x2xf32, #tpu.memory_space<vmem>>, vector<64x2xf32>
    %cst_52 = arith.constant dense<0.000000e+00> : vector<1x2xf32>
    %103 = tpu.matmul %101, %102, %cst_52 {dimension_numbers = #tpu.dot_dimension_numbers<[1], [0], [0], [1], [0, 0, 1, 1], [], []>} : vector<1x64xf32>, vector<64x2xf32>, vector<1x2xf32> -> vector<1x2xf32>
    %104 = arith.addf %100, %103 : vector<1x2xf32>
    %c0_53 = arith.constant 0 : index
    %c0_54 = arith.constant 0 : index
    %105 = vector.load %arg14[%c0_53, %c0_54] : memref<1x2xf32, #tpu.memory_space<vmem>>, vector<1x2xf32>
    %106 = arith.addf %104, %105 : vector<1x2xf32>
    %c0_55 = arith.constant 0 : index
    %c0_56 = arith.constant 0 : index
    %107 = vector.load %arg15[%c0_55, %c0_56] : memref<1x2xf32, #tpu.memory_space<vmem>>, vector<1x2xf32>
    tpu.vector_store %arg15[%c0_55, %c0_56], %106 {strides = array<i32>} : memref<1x2xf32, #tpu.memory_space<vmem>>, vector<1x2xf32>,
    return
  }
  func.func @transform_0(%arg0: i32) -> (i32, i32) {
    %c0_i32 = arith.constant 0 : i32
    %c0_i32_0 = arith.constant 0 : i32
    %c0_i32_1 = arith.constant 0 : i32
    return %c0_i32, %c0_i32_0 : i32, i32
  }
  func.func @transform_1(%arg0: i32) -> (i32, i32) {
    %c0_i32 = arith.constant 0 : i32
    %c0_i32_0 = arith.constant 0 : i32
    %c0_i32_1 = arith.constant 0 : i32
    return %c0_i32, %c0_i32_0 : i32, i32
  }
  func.func @transform_2(%arg0: i32) -> (i32, i32) {
    %c0_i32 = arith.constant 0 : i32
    %c0_i32_0 = arith.constant 0 : i32
    %c0_i32_1 = arith.constant 0 : i32
    return %c0_i32, %c0_i32_0 : i32, i32
  }
  func.func @transform_3(%arg0: i32) -> (i32, i32) {
    %c0_i32 = arith.constant 0 : i32
    %c0_i32_0 = arith.constant 0 : i32
    %c0_i32_1 = arith.constant 0 : i32
    return %c0_i32, %c0_i32_0 : i32, i32
  }
  func.func @transform_4(%arg0: i32) -> (i32, i32) {
    %c0_i32 = arith.constant 0 : i32
    %c0_i32_0 = arith.constant 0 : i32
    %c0_i32_1 = arith.constant 0 : i32
    return %c0_i32, %c0_i32_0 : i32, i32
  }
  func.func @transform_5(%arg0: i32) -> (i32, i32) {
    %c0_i32 = arith.constant 0 : i32
    %c0_i32_0 = arith.constant 0 : i32
    %c0_i32_1 = arith.constant 0 : i32
    return %c0_i32, %c0_i32_0 : i32, i32
  }
  func.func @transform_6(%arg0: i32) -> (i32, i32) {
    %c0_i32 = arith.constant 0 : i32
    %c0_i32_0 = arith.constant 0 : i32
    %c0_i32_1 = arith.constant 0 : i32
    return %c0_i32, %c0_i32_0 : i32, i32
  }
  func.func @transform_7(%arg0: i32) -> (i32, i32) {
    %c0_i32 = arith.constant 0 : i32
    %c0_i32_0 = arith.constant 0 : i32
    %c0_i32_1 = arith.constant 0 : i32
    return %c0_i32, %c0_i32_0 : i32, i32
  }
  func.func @transform_8(%arg0: i32) -> (i32, i32) {
    %c0_i32 = arith.constant 0 : i32
    %c0_i32_0 = arith.constant 0 : i32
    %c0_i32_1 = arith.constant 0 : i32
    return %c0_i32, %c0_i32_0 : i32, i32
  }
  func.func @transform_9(%arg0: i32) -> (i32, i32) {
    %c0_i32 = arith.constant 0 : i32
    %c0_i32_0 = arith.constant 0 : i32
    %c0_i32_1 = arith.constant 0 : i32
    return %c0_i32, %c0_i32_0 : i32, i32
  }
  func.func @transform_10(%arg0: i32) -> (i32, i32) {
    %c0_i32 = arith.constant 0 : i32
    %c0_i32_0 = arith.constant 0 : i32
    %c0_i32_1 = arith.constant 0 : i32
    return %c0_i32, %c0_i32_0 : i32, i32
  }
  func.func @transform_11(%arg0: i32) -> (i32, i32) {
    %c0_i32 = arith.constant 0 : i32
    %c0_i32_0 = arith.constant 0 : i32
    %c0_i32_1 = arith.constant 0 : i32
    return %c0_i32, %c0_i32_0 : i32, i32
  }
  func.func @transform_12(%arg0: i32) -> (i32, i32) {
    %c0_i32 = arith.constant 0 : i32
    %c0_i32_0 = arith.constant 0 : i32
    %c0_i32_1 = arith.constant 0 : i32
    return %c0_i32, %c0_i32_0 : i32, i32
  }
  func.func @transform_13(%arg0: i32) -> (i32, i32) {
    %c0_i32 = arith.constant 0 : i32
    %c0_i32_0 = arith.constant 0 : i32
    %c0_i32_1 = arith.constant 0 : i32
    return %c0_i32, %c0_i32_0 : i32, i32
  }
  func.func @transform_14(%arg0: i32) -> (i32, i32) {
    %c0_i32 = arith.constant 0 : i32
    %c0_i32_0 = arith.constant 0 : i32
    %c0_i32_1 = arith.constant 0 : i32
    return %c0_i32, %c0_i32_0 : i32, i32
  }
}

</mosaic_0001>

<bundles_post_ra>
// kernel: tpu_custom_call.1
= control target key start
LH: loop header
LB: loop body
LE: loop exit
PB: predicated region body
PF: predicated region fallthrough
CT: control target
= control target key end

     0   :  { %vm70_vm0 = vcmask 523264   ;;  %s1056_s0 = inlined_call_operand.vmem [shape: f32[4,64], index: 0, kind: input, shape index: {}]   ;;  %s1057_s1 = inlined_call_operand.vmem [shape: f32[64,64], index: 1, kind: input, shape index: {}]   ;;  %s1058_s2 = inlined_call_operand.vmem [shape: f32[64,2], index: 2, kind: input, shape index: {}]   ;;  %s1059_s3 = inlined_call_operand.vmem [shape: f32[64,2], index: 3, kind: input, shape index: {}]   ;;  %s1060_s4 = inlined_call_operand.vmem [shape: f32[1,64], index: 4, kind: input, shape index: {}]   ;;  %s1061_s5 = inlined_call_operand.vmem [shape: f32[64,16], index: 5, kind: input, shape index: {}]   ;;  %s1062_s6 = inlined_call_operand.vmem [shape: f32[1,16], index: 6, kind: input, shape index: {}]   ;;  %s1063_s7 = inlined_call_operand.vmem [shape: f32[4,11], index: 7, kind: input, shape index: {}]   ;;  %s1064_s8 = inlined_call_operand.vmem [shape: f32[11,1], index: 8, kind: input, shape index: {}]   ;;  %s1065_s9 = inlined_call_operand.vmem [shape: f32[4,1], index: 9, kind: input, shape index: {}]   ;;  %s1066_s10 = inlined_call_operand.vmem [shape: f32[1,64], index: 10, kind: input, shape index: {}]   ;;  %s1067_s11 = inlined_call_operand.vmem [shape: f32[16,2], index: 11, kind: input, shape index: {}]   ;;  %s1068_s12 = inlined_call_operand.vmem [shape: f32[64,2], index: 12, kind: input, shape index: {}]   ;;  %s1069_s13 = inlined_call_operand.vmem [shape: f32[1,2], index: 13, kind: input, shape index: {}]   ;;  %s1070_s14 = inlined_call_operand.hbm [shape: f32[1,2], index: 14, kind: output, shape index: {}]  }
   0x1   :  { %v56_v0 = vld [vmem:[%s1057_s1 + $0x38] sm:$0xff]  ;;  %v55_v1 = vld [vmem:[%s1057_s1 + $0x30] sm:$0xff]  ;;  %v54_v2 = vld [vmem:[%s1057_s1 + $0x28] sm:$0xff] }
   0x2   :  { %82 = vmatpush.msra.mxu0 %v56_v0  ;;  %v51_v3 = vld [vmem:[%s1057_s1 + $0x10] sm:$0xff]  ;;  %v50_v4 = vld [vmem:[%s1057_s1 + $0x8] sm:$0xff]  ;;  %v49_v5 = vld [vmem:[%s1057_s1] sm:$0xff] }
   0x3   :  { %v122_v6 = vld [vmem:[%s1058_s2 + $0x38] sm:$0xff]  ;;  %v53_v7 = vld [vmem:[%s1057_s1 + $0x20] sm:$0xff]  ;;  %v97_v8 = vsel %vm70_vm0, %v51_v3, 0.0  ;;  %v95_v9 = vsel %vm70_vm0, %v50_v4, 0.0  ;;  %v94_v10 = vsel %vm70_vm0, %v49_v5, 0.0  ;;  %v121_v11 = vld [vmem:[%s1058_s2 + $0x30] sm:$0xff] }
   0x4   :  { %83 = vmatpush.msra.mxu0 %v55_v1  ;;  %166 = vmatpush.msra.mxu2 %v122_v6  ;;  %v130_v12 = vld [vmem:[%s1059_s3 + $0x38] sm:$0xff]  ;;  %v96_v14 = vadd.f32 %v95_v9, %v94_v10  ;;  %v120_v15 = vld [vmem:[%s1058_s2 + $0x28] sm:$0xff]  ;;  %v129_v16 = vld [vmem:[%s1059_s3 + $0x30] sm:$0xff]  ;;  %v101_v19 = vsel %vm70_vm0, %v53_v7, 0.0 }
   0x5   :  { %v52_v13 = vld [vmem:[%s1057_s1 + $0x18] sm:$0xff]  ;;  %142 = vmatpush.msra.mxu1 %v130_v12  ;;  %v128_v18 = vld [vmem:[%s1059_s3 + $0x28] sm:$0xff]  ;;  %v119_v21 = vld [vmem:[%s1058_s2 + $0x20] sm:$0xff] }
   0x6   :  { %84 = vmatpush.msra.mxu0 %v54_v2  ;;  %v99_v17 = vsel %vm70_vm0, %v52_v13, 0.0  ;;  %167 = vmatpush.msra.mxu2 %v121_v11  ;;  %v98_v20 = vadd.f32 %v97_v8, %v96_v14  ;;  %v127_v22 = vld [vmem:[%s1059_s3 + $0x20] sm:$0xff] }
   0x7   :  { %143 = vmatpush.msra.mxu1 %v129_v16 }
   0x8   :  { %85 = vmatpush.msra.mxu0 %v53_v7  ;;  %168 = vmatpush.msra.mxu2 %v120_v15 }
   0x9   :  { %19 = vsyncpa [#allocation3], 0  ;;  %v100_v23 = vadd.f32 %v99_v17, %v98_v20  ;;  %144 = vmatpush.msra.mxu1 %v128_v18  ;;  %v118_v24 = vld [vmem:[%s1058_s2 + $0x18] sm:$0xff]  ;;  %v103_v25 = vsel %vm70_vm0, %v54_v2, 0.0  ;;  %v117_v28 = vld [vmem:[%s1058_s2 + $0x10] sm:$0xff]  ;;  %v105_v32 = vsel %vm70_vm0, %v55_v1, 0.0 }
   0xa   :  { %86 = vmatpush.msra.mxu0 %v52_v13  ;;  %169 = vmatpush.msra.mxu2 %v119_v21  ;;  %v126_v26 = vld [vmem:[%s1059_s3 + $0x18] sm:$0xff]  ;;  %v116_v30 = vld [vmem:[%s1058_s2 + $0x8] sm:$0xff]  ;;  %v48_v31 = vld [vmem:[%s1056_s0] sm:$0xf]  ;;  %v107_v33 = vsel %vm70_vm0, %v56_v0, 0.0  ;;  %vm262_vm1 = vcmask 1043456  }
   0xb   :  { %v102_v27 = vadd.f32 %v101_v19, %v100_v23  ;;  %145 = vmatpush.msra.mxu1 %v127_v22  ;;  %v125_v39 = vld [vmem:[%s1059_s3 + $0x10] sm:$0xff]  ;;  %v115_v40 = vld [vmem:[%s1058_s2] sm:$0xff]  ;;  %v124_v42 = vld [vmem:[%s1059_s3 + $0x8] sm:$0xff]  ;;  %s776_s2 = smov 96   ;;  %v777_v47 = vmov 0   ;;  %v778_v55 = vmov 1  }
   0xc   :  { %87 = vmatpush.msra.mxu0 %v51_v3  ;;  %170 = vmatpush.msra.mxu2 %v118_v24  ;;  %v123_v43 = vld [vmem:[%s1059_s3] sm:$0xff]  ;;  %vm188_vm4 = vcmask 84992   ;;  %vm255_vm13 = vcmask 31744   ;;  %vm304_vm14 = vcmask 1042432   ;;  %vm300_vm15 = vcmask 89088  }
   0xd   :  { %v104_v29 = vadd.f32 %v103_v25, %v102_v27  ;;  %146 = vmatpush.msra.mxu1 %v126_v26  ;;  %735 = vset.pattern.permute.xlu0 %v777_v47  ;;  %v950_v56 = vld [vmem:[%s1063_s7] sm:$0xf]  ;;  %s699_s7 = sshll.u32 %s1070_s14, 4  ;;  %s700_s7 = int_to_ptr.hbm [resolvable:$true] %s699_s7 }
   0xe   :  { %88 = vmatpush.msra.mxu0 %v50_v4  ;;  %171 = vmatpush.msra.mxu2 %v117_v28  ;;  %vm181_vm3 = vcmp.gt.f32.partialorder %v950_v56, 0.0 }
   0xf   :  { %v106_v34 = vadd.f32 %v105_v32, %v104_v29  ;;  %147 = vmatpush.msra.mxu1 %v125_v39 }
  0x10   :  { %89 = vmatpush.msra.mxu0 %v49_v5  ;;  %172 = vmatpush.msra.mxu2 %v116_v30 }
  0x11   :  { %708 = vmatmul.msk.f32.vlgmr.msra.gmra.mxu0 %vm70_vm0, %v48_v31  ;;  %v108_v35 = vadd.f32 %v107_v33, %v106_v34  ;;  %148 = vmatpush.msra.mxu1 %v124_v42 }
  0x12   :  { %173 = vmatpush.msra.mxu2 %v115_v40 }
  0x13   :  { %v109_v36 = vrot.slane %v108_v35, 4  ;;  %149 = vmatpush.msra.mxu1 %v123_v43 }
  0x15   :  { %v110_v37 = vadd.f32 %v109_v36, %v108_v35 }
  0x17   :  { %v111_v38 = vrot.slane %v110_v37, 2 }
  0x19   :  { %v112_v41 = vadd.f32 %v111_v38, %v110_v37 }
  0x1b   :  { %v113_v44 = vrot.slane %v112_v41, 1 }
  0x1d   :  { %v114_v45 = vadd.f32 %v113_v44, %v112_v41 }
  0x1f   :  { %709 = vmatmul.msk.f32.vlgmr.msra.gmra.mxu1 %vm70_vm0, %v114_v45 }
  0x8e   :  { %v91_v46 = vpop.f32.mrf.mxu0 }
  0x8f   :  { %410 = vrot.lane.b32.xlu1 %v91_v46, %s776_s2  ;;  %710 = vmatmul.msk.f32.vlgmr.msra.gmra.mxu2 %vm70_vm0, %v91_v46 }
  0x90   :  { %711 = vmatpush.msk.msra.mxu3 %vm262_vm1, %v91_v46 }
  0x9c   :  { %v151_v49 = vpop.f32.mrf.mxu1 }
  0x9d   :  { %v154_v50 = vperm.slane %v151_v49, 0 }
 0x101   :  { %v411_v48 = vpop.permute.xlu1 %410 }
 0x102   :  { %716 = vmatpush.msk.msrb.mxu0 %vm262_vm1, %v411_v48 }
 0x112   :  { %v175_v51 = vpop.f32.mrf.mxu2 }
 0x113   :  { %v176_v52 = vadd.f32 %v175_v51, %v154_v50 }
 0x115   :  { %vm178_vm2 = vcmp.ge.f32.partialorder %v176_v52, 0.0  ;;  %v179_v53 = vmul.f32 0.2, %v176_v52 }
 0x117   :  { %v180_v54 = vsel %vm178_vm2, %v176_v52, %v179_v53  ;;  %vm477_vm2 = vcmask 261120  }
 0x118   :  { %184 = vperm.xlu0 %735, %v180_v54  }
 0x120   :  { %736 = vset.pattern.permute.xlu0 %v778_v55 }
 0x121   :  { %340 = vperm.xlu0 %736, %v180_v54  }
 0x129   :  { %738 = vset.pattern.permute.xlu0 %v777_v47 }
 0x18a   :  { %v185_v57 = vpop.permute.xlu0 %184 }
 0x18b   :  { %v187_v58 = vsel %vm181_vm3, %v185_v57, -1e+30 }
 0x18c   :  { %v189_v59 = vsel %vm188_vm4, %v187_v58, -inf }
 0x18d   :  { %v190_v60 = vrot.slane %v189_v59, 4 }
 0x18f   :  { %v191_v61 = vmax.f32 %v189_v59, %v190_v60  ;;  %v58_v60 = vld [vmem:[%s1064_s8] sm:$0xff] }
 0x190   :  { %290 = vperm.xlu0 %738, %v58_v60  }
 0x191   :  { %v192_v62 = vrot.slane %v191_v61, 2 }
 0x193   :  { %v193_v63 = vmax.f32 %v191_v61, %v192_v62  ;;  %v341_v0 = vpop.permute.xlu0 %340  ;;  %v59_v61 = vld [vmem:[%s1064_s8 + $0x8] sm:$0x7]  ;;  %v60_v62 = vld [vmem:[%s1065_s9] sm:$0xf] }
 0x194   :  { %v343_v1 = vsel %vm181_vm3, %v341_v0, -1e+30  ;;  %vm664_vm3 = vcmask 130048  }
 0x195   :  { %v194_v2 = vrot.slane %v193_v63, 1  ;;  %v344_v3 = vsel %vm188_vm4, %v343_v1, -inf }
 0x196   :  { %v345_v4 = vrot.slane %v344_v3, 4 }
 0x197   :  { %v195_v5 = vmax.f32 %v193_v63, %v194_v2  ;;  %v740_v2 = vld [vmem:[%s1060_s4] ss:$0 sm:$0xff] }
 0x198   :  { %v346_v6 = vmax.f32 %v344_v3, %v345_v4  ;;  %330 = vperm.xlu0 %738, %v60_v62  }
 0x199   :  { %v196_v7 = vsub.f32 %v187_v58, %v195_v5 }
 0x19a   :  { %v347_v8 = vrot.slane %v346_v6, 2 }
 0x19b   :  { %v197_v9 = vmul.f32 1.442695, %v196_v7 }
 0x19c   :  { %v348_v10 = vmax.f32 %v346_v6, %v347_v8 }
 0x19d   :  { %742 = vpow2.f32 %v197_v9 }
 0x19e   :  { %v349_v11 = vrot.slane %v348_v10, 1 }
 0x1a0   :  { %v350_v12 = vmax.f32 %v348_v10, %v349_v11  ;;  %472 = vrot.lane.b32.xlu0 %v740_v2, %s776_s2 }
 0x1a2   :  { %v351_v13 = vsub.f32 %v343_v1, %v350_v12 }
 0x1a3   :  { %v743_v14 = vpop.eup %742 }
 0x1a4   :  { %v352_v15 = vmul.f32 1.442695, %v351_v13  ;;  %v199_v16 = vmul.f32 %v743_v14, %v950_v56  ;;  %v69_v13 = vld [vmem:[%s1061_s5 + $0x38] sm:$0xff]  ;;  %v68_v14 = vld [vmem:[%s1061_s5 + $0x30] sm:$0xff] }
 0x1a5   :  { %493 = vmatpush.msrb.mxu2 %v69_v13 }
 0x1a6   :  { %744 = vpow2.f32 %v352_v15  ;;  %v200_v17 = vsel %vm188_vm4, %v199_v16, 0.0  ;;  %v67_v15 = vld [vmem:[%s1061_s5 + $0x28] sm:$0xff] }
 0x1a7   :  { %v201_v18 = vrot.slane %v200_v17, 4  ;;  %494 = vmatpush.msrb.mxu2 %v68_v14 }
 0x1a9   :  { %v202_v19 = vadd.f32 %v201_v18, %v200_v17  ;;  %495 = vmatpush.msrb.mxu2 %v67_v15  ;;  %v65_v17 = vld [vmem:[%s1061_s5 + $0x18] sm:$0xff]  ;;  %v64_v18 = vld [vmem:[%s1061_s5 + $0x10] sm:$0xff] }
 0x1ab   :  { %v203_v20 = vrot.slane %v202_v19, 2 }
 0x1ac   :  { %v745_v21 = vpop.eup %744 }
 0x1ad   :  { %v204_v22 = vadd.f32 %v203_v20, %v202_v19  ;;  %v354_v23 = vmul.f32 %v745_v21, %v950_v56  ;;  %v63_v19 = vld [vmem:[%s1061_s5 + $0x8] sm:$0xff]  ;;  %v62_v20 = vld [vmem:[%s1061_s5] sm:$0xff] }
 0x1af   :  { %v205_v24 = vrot.slane %v204_v22, 1  ;;  %v355_v25 = vsel %vm188_vm4, %v354_v23, 0.0 }
 0x1b0   :  { %v356_v26 = vrot.slane %v355_v25, 4 }
 0x1b1   :  { %v206_v27 = vadd.f32 %v205_v24, %v204_v22 }
 0x1b2   :  { %v357_v28 = vadd.f32 %v356_v26, %v355_v25 }
 0x1b3   :  { %v207_v29 = vmax.f32 %v206_v27, 1e-30 }
 0x1b4   :  { %v358_v30 = vrot.slane %v357_v28, 2 }
 0x1b5   :  { %746 = vrcp.f32 %v207_v29  ;;  %v219_v38 = vand.u32 2147483648, %v207_v29  ;;  %v217_v40 = vand.u32 2147483647, %v207_v29  ;;  %vm213_vm6 = vweird.f32 %v207_v29 }
 0x1b6   :  { %v359_v31 = vadd.f32 %v358_v30, %v357_v28 }
 0x1b7   :  { %v220_v42 = vor.u32 1.1754944e-38, %v219_v38  ;;  %vm218_vm8 = vcmp.eq.f32.partialorder %v217_v40, 8.507059e+37  ;;  %v639_v40 = vld [vmem:[%s1068_s12 + $0x30] sm:$0xff] }
 0x1b8   :  { %v360_v32 = vrot.slane %v359_v31, 1 }
 0x1ba   :  { %v361_v33 = vadd.f32 %v360_v32, %v359_v31 }
 0x1bb   :  { %v747_v34 = vpop.eup %746 }
 0x1bc   :  { %v209_v35 = vmul.f32 %v747_v34, %v207_v29  ;;  %v362_v36 = vmax.f32 %v361_v33, 1e-30  ;;  %vm214_vm5 = vweird.f32 %v747_v34 }
 0x1bd   :  { %vm215_vm7 = vmor %vm213_vm6, %vm214_vm5 }
 0x1be   :  { %v210_v37 = vsub.f32 1.0, %v209_v35  ;;  %748 = vrcp.f32 %v362_v36  ;;  %v374_v50 = vand.u32 2147483648, %v362_v36  ;;  %v372_v52 = vand.u32 2147483647, %v362_v36 }
 0x1bf   :  { %vm368_vm10 = vweird.f32 %v362_v36 }
 0x1c0   :  { %v211_v39 = vmul.f32 %v747_v34, %v210_v37  ;;  %v375_v54 = vor.u32 1.1754944e-38, %v374_v50  ;;  %vm373_vm12 = vcmp.eq.f32.partialorder %v372_v52, 8.507059e+37  ;;  %v741_v50 = vld [vmem:[%s1062_s6] ss:$0 sm:$0xff]  ;;  %s779_s6 = smov [#allocation2]  }
 0x1c1   :  { %s697_s3 = sshll.u32 %s779_s6, 4  ;;  %s698_s3 = int_to_ptr.vmem [resolvable:$true] %s697_s3 }
 0x1c2   :  { %v212_v41 = vadd.f32 %v747_v34, %v211_v39  ;;  %524 = vxpose.xlu0.b32.start.end [1/1] (short) (narrow) %v950_v56, 16  ;;  %v640_v39 = vld [vmem:[%s1068_s12 + $0x38] sm:$0xff] }
 0x1c3   :  { %652 = vmatpush.msra.mxu0 %v640_v39 }
 0x1c4   :  { %v749_v43 = vpop.eup %748  ;;  %v216_v44 = vsel %vm215_vm7, %v747_v34, %v212_v41  ;;  %v638_v41 = vld [vmem:[%s1068_s12 + $0x28] sm:$0xff] }
 0x1c5   :  { %v221_v45 = vsel %vm218_vm8, %v220_v42, %v216_v44  ;;  %v364_v46 = vmul.f32 %v749_v43, %v362_v36  ;;  %vm369_vm9 = vweird.f32 %v749_v43  ;;  %653 = vmatpush.msra.mxu0 %v639_v40  ;;  %v637_v42 = vld [vmem:[%s1068_s12 + $0x20] sm:$0xff] }
 0x1c6   :  { %v222_v48 = vmul.f32 %v221_v45, %v199_v16  ;;  %vm370_vm11 = vmor %vm368_vm10, %vm369_vm9  ;;  %v66_v16 = vld [vmem:[%s1061_s5 + $0x20] sm:$0xff]  ;;  %v635_v45 = vld [vmem:[%s1068_s12 + $0x10] sm:$0xff] }
 0x1c7   :  { %v365_v49 = vsub.f32 1.0, %v364_v46  ;;  %496 = vmatpush.msrb.mxu2 %v66_v16  ;;  %654 = vmatpush.msra.mxu0 %v638_v41  ;;  %v630_v44 = vld [vmem:[%s1067_s11] sm:$0xff]  ;;  %v634_v46 = vld [vmem:[%s1068_s12 + $0x8] sm:$0xff] }
 0x1c8   :  { %223 = vxpose.xlu1.b32.start.end [1/1] (short) (narrow) %v222_v48, 16 }
 0x1c9   :  { %v366_v51 = vmul.f32 %v749_v43, %v365_v49  ;;  %655 = vmatpush.msra.mxu0 %v637_v42  ;;  %v632_v49 = vld [vmem:[%s1066_s10] sm:$0x1] }
 0x1cb   :  { %v367_v53 = vadd.f32 %v749_v43, %v366_v51 }
 0x1cd   :  { %v371_v57 = vsel %vm370_vm11, %v749_v43, %v367_v53  ;;  %v636_v43 = vld [vmem:[%s1068_s12 + $0x18] sm:$0xff] }
 0x1ce   :  { %v376_v58 = vsel %vm373_vm12, %v375_v54, %v371_v57  ;;  %656 = vmatpush.msra.mxu0 %v636_v43 }
 0x1cf   :  { %v377_v59 = vmul.f32 %v376_v58, %v354_v23 }
 0x1d0   :  { %657 = vmatpush.msra.mxu0 %v635_v45 }
 0x1d1   :  { %378 = vxpose.xlu2.b32.start.end [1/1] (short) (narrow) %v377_v59, 16 }
 0x1d2   :  { %658 = vmatpush.msra.mxu0 %v634_v46 }
 0x202   :  { %v291_v5 = vpop.permute.xlu0 %290 }
 0x20a   :  { %v331_v21 = vpop.permute.xlu0 %330 }
 0x212   :  { %v473_v23 = vpop.permute.xlu0 %472 }
 0x229   :  { %739 = vset.pattern.permute.xlu0 %v778_v55 }
 0x233   :  { %737 = vset.pattern.permute.xlu2 %v777_v47 }
 0x242   :  { %295 = vperm.xlu2 %737, %v59_v61  }
 0x266   :  { %v540_v31 = vpop.trf.xlu0 }
 0x26a   :  { %v394_v63 = vpop.trf.xlu2 }
 0x26b   :  { %717 = vmatmul.msk.f32.vlgmr.msrb.gmra.mxu0 %vm255_vm13, %v394_v63 }
 0x26c   :  { %v239_v47 = vpop.trf.xlu1 }
 0x26d   :  { %712 = vmatmul.msk.f32.vlgmr.msra.gmra.mxu3 %vm255_vm13, %v239_v47 }
 0x26e   :  { %v541_v55 = vpop.trf.xlu0 }
 0x272   :  { %v395_v0 = vpop.trf.xlu2 }
 0x273   :  { %718 = vmatmul.msk.f32.gmra.mxu0 %vm255_vm13, %v395_v0  ;;  %v688_v0 = vld [vmem:[%s1069_s13] sm:$0x1] }
 0x274   :  { %v240_v1 = vpop.trf.xlu1 }
 0x275   :  { %713 = vmatmul.msk.f32.gmra.mxu3 %vm255_vm13, %v240_v1 }
 0x29c   :  { %v296_v4 = vpop.permute.xlu2 %295 }
 0x2e8   :  { %v437_v3 = vpop.f32.mrf.mxu0 }
 0x2e9   :  { %v443_v9 = vmul.f32 %v437_v3, %v291_v5 }
 0x2f0   :  { %v282_v6 = vpop.f32.mrf.mxu3  ;;  %v440_v7 = vpop.f32.mrf.mxu0 }
 0x2f1   :  { %v444_v8 = vmul.f32 %v440_v7, %v296_v4  ;;  %v298_v12 = vmul.f32 %v291_v5, %v282_v6 }
 0x2f3   :  { %719 = vmatpush.msk.msrb.mxu1 %vm304_vm14, %v444_v8 }
 0x2f5   :  { %466 = vmatpush.msrb.mxu1 %v443_v9 }
 0x2f6   :  { %720 = vmatmul.msk.f32.vlgmr.msrb.gmra.mxu1 %vm300_vm15, %v377_v59 }
 0x2f8   :  { %v285_v10 = vpop.f32.mrf.mxu3 }
 0x2f9   :  { %v299_v11 = vmul.f32 %v296_v4, %v285_v10 }
 0x2fb   :  { %714 = vmatpush.msk.msrb.mxu3 %vm304_vm14, %v299_v11 }
 0x2fd   :  { %323 = vmatpush.msrb.mxu3 %v298_v12 }
 0x2fe   :  { %715 = vmatmul.msk.f32.vlgmr.msrb.gmra.mxu3 %vm300_vm15, %v222_v48  ;;  %v633_v48 = vld [vmem:[%s1068_s12] sm:$0xff] }
 0x2ff   :  { %516 = vmatpush.msra.mxu3 %v65_v17  ;;  %659 = vmatpush.msra.mxu0 %v633_v48 }
 0x300   :  { %728 = vmatmul.msk.f32.vlgmr.msra.gmra.mxu0 %vm70_vm0, %v632_v49  ;;  %vm690_vm0 = vcmask 8192  }
 0x301   :  { %517 = vmatpush.msra.mxu3 %v64_v18 }
 0x303   :  { %518 = vmatpush.msra.mxu3 %v63_v19 }
 0x305   :  { %519 = vmatpush.msra.mxu3 %v62_v20 }
 0x373   :  { %v468_v22 = vpop.f32.mrf.mxu1 }
 0x374   :  { %v471_v24 = vmul.f32 %v468_v22, %v331_v21 }
 0x376   :  { %v475_v25 = vadd.f32 %v473_v23, %v471_v24 }
 0x378   :  { %v476_v26 = vmax.f32 %v475_v25, 0.0 }
 0x37a   :  { %721 = vmatmul.msk.f32.vlgmr.msrb.gmra.mxu2 %vm477_vm2, %v476_v26 }
 0x37d   :  { %v661_v63 = vpop.f32.mrf.mxu0 }
 0x381   :  { %v325_v27 = vpop.f32.mrf.mxu3 }
 0x382   :  { %v333_v28 = vmul.f32 %v331_v21, %v325_v27 }
 0x384   :  { %v337_v29 = vadd.f32 %v740_v2, %v333_v28 }
 0x386   :  { %v338_v30 = vmax.f32 %v337_v29, 0.0 }
 0x388   :  { %722 = vmatmul.msk.f32.vlgmr.msra.gmra.mxu3 %vm477_vm2, %v338_v30 }
 0x3fd   :  { %v498_v32 = vpop.f32.mrf.mxu2 }
 0x40b   :  { %v521_v33 = vpop.f32.mrf.mxu3 }
 0x40c   :  { %v522_v34 = vadd.f32 %v521_v33, %v498_v32 }
 0x40e   :  { %723 = vmatpush.msk.msra.mxu1 %vm262_vm1, %v522_v34  ;;  %vm622_vm1 = vcmask 125952  }
 0x40f   :  { %724 = vmatmul.msk.f32.vlgmr.msra.gmra.mxu1 %vm255_vm13, %v540_v31 }
 0x417   :  { %725 = vmatmul.msk.f32.gmra.mxu1 %vm255_vm13, %v541_v55 }
 0x48c   :  { %v582_v35 = vpop.f32.mrf.mxu1 }
 0x48d   :  { %v588_v38 = vmul.f32 %v582_v35, %v291_v5 }
 0x494   :  { %v585_v36 = vpop.f32.mrf.mxu1 }
 0x495   :  { %v589_v37 = vmul.f32 %v585_v36, %v296_v4 }
 0x497   :  { %726 = vmatpush.msk.msra.mxu2 %vm304_vm14, %v589_v37 }
 0x499   :  { %611 = vmatpush.msra.mxu2 %v588_v38 }
 0x49a   :  { %727 = vmatmul.msk.f32.vlgmr.msra.gmra.mxu2 %vm300_vm15, %v950_v56  ;;  %v631_v56 = vld [vmem:[%s1067_s11 + $0x8] sm:$0xff] }
 0x49b   :  { %682 = vmatpush.msrb.mxu3 %v631_v56 }
 0x49d   :  { %683 = vmatpush.msrb.mxu3 %v630_v44 }
 0x51d   :  { %v613_v51 = vpop.f32.mrf.mxu2 }
 0x51e   :  { %v616_v52 = vmul.f32 %v613_v51, %v331_v21 }
 0x520   :  { %v621_v53 = vadd.f32 %v741_v50, %v616_v52 }
 0x522   :  { %v623_v54 = vsel %vm622_vm1, %v621_v53, 0.0 }
 0x523   :  { %v624_v57 = vrot.slane %v623_v54, 4 }
 0x525   :  { %v625_v58 = vadd.f32 %v624_v57, %v623_v54 }
 0x527   :  { %v626_v59 = vrot.slane %v625_v58, 2 }
 0x529   :  { %v627_v60 = vadd.f32 %v626_v59, %v625_v58 }
 0x52b   :  { %v628_v61 = vrot.slane %v627_v60, 1 }
 0x52d   :  { %v629_v62 = vadd.f32 %v628_v61, %v627_v60 }
 0x52f   :  { %729 = vmatmul.msk.f32.vlgmr.msrb.gmra.mxu3 %vm664_vm3, %v629_v62 }
 0x5b2   :  { %v685_v47 = vpop.f32.mrf.mxu3 }
 0x5b3   :  { %v686_v1 = vadd.f32 %v685_v47, %v661_v63 }
 0x5b5   :  { %v689_v2 = vadd.f32 %v688_v0, %v686_v1 }
 0x5b7   :  { %691 = vst.msk [vmem:[#allocation2] sm:$0x1] %vm690_vm0, %v689_v2 }
 0x5b8   :  { %702 = dma.vmem_to_hbm [thread:$0]  %s698_s3, 16, %s700_s7, [#allocation3]  }
 0x5b9   :  { %774 = dma.done.wait [#allocation3], 16  }
 0x5ba   :  { %775 = vsyncadd [#allocation3], 4294967280 }
 0x5bb   :  { %707 = vsyncpa [#allocation3], 1 }

</bundles_post_ra>
